<compile_context>
chip_gen: v7x
topology: tpu7x:2x2x1
jax: 0.10.0
libtpu: 0.0.40
codegen_flags: <defaults>
</compile_context>

<pallas_src>
import functools

import jax
import jax.numpy as jnp
from jax.experimental import pallas as pl
from jax.experimental.pallas import tpu as pltpu

_LANE = 128


def _vq_kernel(x_ref, neg2cbt_ref, cbsqr_ref, idx_ref, *, use_bf16_matmul):
    # x_ref:       (TN, D)             activation tile (f32)
    # neg2cbt_ref: (D, K)              -2 * codebook, pre-transposed (grid-invariant)
    # cbsqr_ref:   (1, K)              per-codeword squared norms (grid-invariant)
    # idx_ref:     (1, TN//128, 128)   int32 argmin indices, lane-dense layout
    x = x_ref[...]
    w = neg2cbt_ref[...]
    if use_bf16_matmul:
        # v6e/v7x: ~3x MXU throughput; may flip argmin on near-ties vs the f32 reference.
        x = x.astype(jnp.bfloat16)
        w = w.astype(jnp.bfloat16)

    # scores = -2 * (x @ codebook.T)   (TN, K), f32 accumulation on the MXU.
    scores = jnp.dot(x, w, preferred_element_type=jnp.float32)

    # distance up to the per-row constant ||x||^2 (cannot change the argmin).
    dist = cbsqr_ref[...] + scores                        # (TN, K)

    idx = jnp.argmin(dist, axis=1).astype(jnp.int32)      # first-min, matches torch.min
    idx_ref[...] = idx.reshape(idx_ref.shape)             # lane-dense store


def _pick_tile_n(n):
    # Large tiles amortize the ~0.35us per-grid-step overhead; keep >= 2 grid steps
    # when possible so dimension_semantics=("parallel",) can shard over both v7x TCs.
    for t in (1024, 512, 256):
        if n >= 2 * t:
            return t
    return 128


def vq_indices(x_flat, codebook, *, tile_n=None, use_bf16_matmul=False):
    """x_flat: (N, D) float32, codebook: (K, D) float32 -> (N,) int32 nearest-code ids."""
    n, d = x_flat.shape
    k, dc = codebook.shape
    assert d == dc, "embedding dims must match"

    if tile_n is None:
        tile_n = _pick_tile_n(n)
    assert tile_n % _LANE == 0

    num_tiles = pl.cdiv(n, tile_n)
    n_pad = num_tiles * tile_n
    x_flat = x_flat.astype(jnp.float32)
    if n_pad != n:
        # Pad rows are zeros; their (ignored) argmin is still a valid codebook index.
        x_flat = jnp.pad(x_flat, ((0, n_pad - n), (0, 0)))

    # Grid-invariant codebook preprocessing, hoisted out of the kernel (done once).
    cb = codebook.astype(jnp.float32)
    neg2_cbt = (-2.0 * cb).T                               # (D, K)
    cb_sqr = jnp.sum(cb * cb, axis=1)[None, :]             # (1, K)

    # TODO(synk): for production-sized codebooks, tile K over a second grid axis with a
    # running (min, argmin) VMEM scratch and single-buffer the invariant codebook operand
    # (pl.Buffered(1)) -- unnecessary at K=128 (16 KiB), and critical on v7x (64 MiB VMEM).

    out = pl.pallas_call(
        functools.partial(_vq_kernel, use_bf16_matmul=use_bf16_matmul),
        out_shape=jax.ShapeDtypeStruct((num_tiles, tile_n // _LANE, _LANE), jnp.int32),
        grid_spec=pltpu.PrefetchScalarGridSpec(
            num_scalar_prefetch=0,
            grid=(num_tiles,),
            in_specs=[
                pl.BlockSpec((tile_n, d), lambda i: (i, 0)),
                pl.BlockSpec((d, k), lambda i: (0, 0)),
                pl.BlockSpec((1, k), lambda i: (0, 0)),
            ],
            out_specs=pl.BlockSpec((1, tile_n // _LANE, _LANE), lambda i: (i, 0, 0)),
        ),
        compiler_params=pltpu.CompilerParams(
            dimension_semantics=("parallel",)),
    )(x_flat, neg2_cbt, cb_sqr)

    return out.reshape(-1)[:n]


@functools.partial(jax.jit, static_argnames=("use_bf16_matmul",))
def _vq_forward(z_e_x, codebook, use_bf16_matmul=False):
    b, d, h, w = z_e_x.shape
    x_flat = jnp.transpose(z_e_x, (0, 2, 3, 1)).reshape(-1, d)   # NCHW -> (N, D)
    idx = vq_indices(x_flat, codebook, use_bf16_matmul=use_bf16_matmul)
    return idx.reshape(b, h, w)


class VQEmbedding:
    """JAX/Pallas port of the PyTorch VQEmbedding module (forward pass)."""

    def __init__(self, K, D, key, use_bf16_matmul=False):
        self.K = K
        self.D = D
        self.use_bf16_matmul = use_bf16_matmul
        # nn.Embedding(K, D) with weight ~ U(-1/K, 1/K)
        self.codebook = jax.random.uniform(
            key, (K, D), dtype=jnp.float32, minval=-1.0 / K, maxval=1.0 / K)

    def forward(self, z_e_x):
        # z_e_x: (B, D, H, W) -> indices (B, H, W) int32
        return _vq_forward(z_e_x, self.codebook, use_bf16_matmul=self.use_bf16_matmul)

    def select(self, indices):
        return jnp.take(self.codebook, indices, axis=0)

    def straight_through(self, z_e_x):
        b, d, h, w = z_e_x.shape
        idx = self.forward(z_e_x).reshape(-1)
        codes = jnp.take(self.codebook, idx, axis=0).reshape(b, h, w, d)
        z_q_x = jnp.transpose(codes, (0, 3, 1, 2))
        # TODO(synk): straight-through gradient (custom_vjp) not implemented -- forward only.
        return z_q_x, z_q_x


def _reference_vq(z_e_x, codebook):
    """Pure-JAX reference replicating the PyTorch math exactly."""
    b, d, h, w = z_e_x.shape
    x = jnp.transpose(z_e_x, (0, 2, 3, 1)).reshape(-1, d)
    cb_sqr = jnp.sum(codebook ** 2, axis=1)
    x_sqr = jnp.sum(x ** 2, axis=1, keepdims=True)
    dist = (cb_sqr + x_sqr) - 2.0 * (x @ codebook.T)
    return jnp.argmin(dist, axis=1).astype(jnp.int32).reshape(b, h, w)


if __name__ == "__main__":
    key = jax.random.PRNGKey(0)
    k_cb, k_x, k_x2 = jax.random.split(key, 3)

    K, D = 128, 32          # codebook size, embedding dim
    B, H, W = 2, 16, 16     # N = B*H*W = 512 -> tile_n=256, grid=2 (both v7x TCs)

    vqe = VQEmbedding(K, D, k_cb)
    z_e_x = jax.random.normal(k_x, (B, D, H, W), dtype=jnp.float32)

    latents = jax.block_until_ready(vqe.forward(z_e_x))
    ref = jax.block_until_ready(_reference_vq(z_e_x, vqe.codebook))
    assert latents.shape == (B, H, W)
    assert latents.dtype == jnp.int32
    assert bool(jnp.all(latents == ref))

    # Ragged case: N = 1*7*9 = 63 is not a multiple of the tile -> exercises padding path.
    z_small = jax.random.normal(k_x2, (1, D, 7, 9), dtype=jnp.float32)
    lat_small = jax.block_until_ready(vqe.forward(z_small))
    ref_small = jax.block_until_ready(_reference_vq(z_small, vqe.codebook))
    assert bool(jnp.all(lat_small == ref_small))

    print("KERNEL_OK")
</pallas_src>

<mosaic_0001>
module attributes {stable_mosaic.version = 11 : i64} {
  func.func @_vq_kernel(%arg0: i32, %arg1: memref<256x32xf32, #tpu.memory_space<vmem>>, %arg2: memref<32x128xf32, #tpu.memory_space<vmem>>, %arg3: memref<1x128xf32, #tpu.memory_space<vmem>>, %arg4: memref<1x2x128xi32, #tpu.memory_space<vmem>>) attributes {dimension_semantics = [#tpu.dimension_semantics<parallel>], iteration_bounds = array<i64: 2>, scalar_prefetch = 0 : i64, scratch_operands = 0 : i64, tpu.core_type = #tpu.core_type<tc>, window_params = [{transform_indices = @transform_0, window_bounds = array<i64: 256, 32>}, {pipeline_mode = #tpu.pipeline_mode<synchronous>, transform_indices = @transform_1, window_bounds = array<i64: 32, 128>}, {pipeline_mode = #tpu.pipeline_mode<synchronous>, transform_indices = @transform_2, window_bounds = array<i64: 1, 128>}, {transform_indices = @transform_3, window_bounds = array<i64: 1, 2, 128>}]} {
    %c0 = arith.constant 0 : index
    %c0_0 = arith.constant 0 : index
    %0 = vector.load %arg1[%c0, %c0_0] : memref<256x32xf32, #tpu.memory_space<vmem>>, vector<256x32xf32>
    %c0_1 = arith.constant 0 : index
    %c0_2 = arith.constant 0 : index
    %1 = vector.load %arg2[%c0_1, %c0_2] : memref<32x128xf32, #tpu.memory_space<vmem>>, vector<32x128xf32>
    %cst = arith.constant dense<0.000000e+00> : vector<256x128xf32>
    %2 = tpu.matmul %0, %1, %cst {dimension_numbers = #tpu.dot_dimension_numbers<[1], [0], [0], [1], [0, 0, 1, 1], [], []>} : vector<256x32xf32>, vector<32x128xf32>, vector<256x128xf32> -> vector<256x128xf32>
    %c0_3 = arith.constant 0 : index
    %c0_4 = arith.constant 0 : index
    %3 = vector.load %arg3[%c0_3, %c0_4] : memref<1x128xf32, #tpu.memory_space<vmem>>, vector<1x128xf32>
    %4 = vector.broadcast %3 : vector<1x128xf32> to vector<256x128xf32>
    %5 = arith.addf %4, %2 : vector<256x128xf32>
    %6 = tpu.reduce_index %5 {axis = 1 : i32, kind = #tpu.reduction_kind<arg_min>} : vector<256x128xf32> -> vector<256xi32>
    %7 = vector.shape_cast %6 : vector<256xi32> to vector<1x2x128xi32>
    %c0_5 = arith.constant 0 : index
    %c0_6 = arith.constant 0 : index
    %c0_7 = arith.constant 0 : index
    %8 = vector.load %arg4[%c0_5, %c0_6, %c0_7] : memref<1x2x128xi32, #tpu.memory_space<vmem>>, vector<1x2x128xi32>
    tpu.vector_store %arg4[%c0_5, %c0_6, %c0_7], %7 {strides = array<i32>} : memref<1x2x128xi32, #tpu.memory_space<vmem>>, vector<1x2x128xi32>,
    return
  }
  func.func @transform_0(%arg0: i32) -> (i32, i32) {
    %c0_i32 = arith.constant 0 : i32
    %c0_i32_0 = arith.constant 0 : i32
    return %arg0, %c0_i32 : i32, i32
  }
  func.func @transform_1(%arg0: i32) -> (i32, i32) {
    %c0_i32 = arith.constant 0 : i32
    %c0_i32_0 = arith.constant 0 : i32
    %c0_i32_1 = arith.constant 0 : i32
    return %c0_i32, %c0_i32_0 : i32, i32
  }
  func.func @transform_2(%arg0: i32) -> (i32, i32) {
    %c0_i32 = arith.constant 0 : i32
    %c0_i32_0 = arith.constant 0 : i32
    %c0_i32_1 = arith.constant 0 : i32
    return %c0_i32, %c0_i32_0 : i32, i32
  }
  func.func @transform_3(%arg0: i32) -> (i32, i32, i32) {
    %c0_i32 = arith.constant 0 : i32
    %c0_i32_0 = arith.constant 0 : i32
    %c0_i32_1 = arith.constant 0 : i32
    return %arg0, %c0_i32, %c0_i32_0 : i32, i32, i32
  }
}

</mosaic_0001>

<bundles_post_ra>
// kernel: _vq_forward.1
= control target key start
LH: loop header
LB: loop body
LE: loop exit
PB: predicated region body
PF: predicated region fallthrough
CT: control target
= control target key end

     0   :  { %8 = vsyncpa [#allocation3], 0  ;;  %s1492_s0 = inlined_call_operand.hbm [shape: f32[512,32], index: 0, kind: input, shape index: {}]   ;;  %s1493_s1 = inlined_call_operand.vmem [shape: f32[32,128], index: 1, kind: input, shape index: {}]   ;;  %s1494_s2 = inlined_call_operand.vmem [shape: f32[1,128], index: 2, kind: input, shape index: {}]   ;;  %s1495_s3 = inlined_call_operand.vmem [shape: s32[2,2,128], index: 3, kind: output, shape index: {}]  }
   0x1   :  { %10 = vsyncpa [#allocation3 + $0x1], 0  ;;  %s1189_s12 = smov 0   ;;  %s1191_s13 = smov 0  }
   0x2   :  { %s1193_s14 = smov 0   ;;  %s1195_s15 = smov 0  }
   0x3 LB: > { %s1208_s16 = sadd.s32 4294967295, %s1164_s15   ;;  %s1211_s17 = sadd.s32 1, %s1164_s15   ;;  %s1164_s15 = sphi %s1195_s15, %s1502_s15   ;;  %s1160_s14 = sphi %s1193_s14, %s1501_s14   ;;  %s1156_s13 = sphi %s1191_s13, %s1500_s13   ;;  %s1152_s12 = sphi %s1189_s12, %s1499_s12  }
   0x4   : > { %s20_s18 = ssub.s32 %s1164_s15, %s1211_s17  ;;  %s23_s19 = sadd.s32 1, %s1160_s14 }
   0x5   : > { %p21_p0 = scmp.eq.s32.totalorder %s20_s18, 0  ;;  %p30_p1 = scmp.ne.s32.totalorder %s1160_s14, %s1156_s13 }
   0x6   : > { %p31_p2 = scmp.eq.s32.totalorder %s1164_s15, 0  ;;  %p36_p3 = scmp.ne.s32.totalorder %s1156_s13, %s1152_s12 }
   0x7   : > { %s1221_s20 = scalar_select %p21_p0, %s1160_s14, %s23_s19  }
   0x8   : > { %p32_p4 = por %p31_p2, %p30_p1  ;;  %p37_p5 = scmp.eq.s32.totalorder %s1208_s16, 0 }
   0x9   : > { %p1065_p6 = scmp.lt.s32.totalorder %s1164_s15, 2  ;;  %s134_s22 = sand.u32 1, %s1160_s14  }
   0xa   : > { %p1225_p7 = por %p37_p5, %p36_p3  ;;  %s912_s23 = sshll.u32 %s134_s22, 8 }
   0xb   : > { %s954_s24 = sshll.u32 %s1164_s15, 12  ;;  %s138_s28 = scalar_lea.vmem [#allocation2], %s912_s23 }
   0xc   : > { %s1234_s27 = scalar_lea.hbm %s1492_s0, %s954_s24  ;;  %s145_s29 = sshll.u32 %s138_s28, 4  ;;  %s1236_s29 = int_to_ptr.vmem [resolvable:$true] %s145_s29 }
   0xd   : > { %p1238_p8 = pnand %p1065_p6, %p32_p4  ;;  %s1243_s4 = scalar_lea.sflag [#allocation3], %s134_s22 }
   0xe   : > { %s1100_s5 = scalar_lea.hbm %s1234_s27, 4096  ;;  %s1105_s8 = scalar_lea.hbm %s1492_s0, 8192 }
   0xf   : > { %p1101_p10 = scmp.ne.s32.totalorder %s1234_s27, %s1100_s5  ;;  %p1102_p11 = pneg %p1238_p8 }
  0x10   : > { %p1106_p0 = scmp.lt.u32.totalorder %s1234_s27, %s1492_s0  ;;  %p1107_p1 = scmp.lt.u32.totalorder %s1105_s8, %s1100_s5 }
  0x11   : > { %p1103_p12 = pnand %p1102_p11, %p1101_p10  ;;  %p1109_p3 = scmp.lt.u32.totalorder %s1100_s5, %s1234_s27 }
  0x12   : > { %p1108_p2 = por %p1107_p1, %p1106_p0 }
  0x13   : > { %p1104_p13 = pneg %p1103_p12 }
  0x14   : > { %p1110_p4 = por %p1109_p3, %p1108_p2 }
  0x16   : > { %p1111_p5 = pnand %p1110_p4, %p1104_p13 }
  0x18   : > { %1114 = shalt.err (!%p1111_p5)
}
  0x19   : > { %s1115_s11 = scalar_lea.vmem %s1236_s29, 4096  ;;  %s1166_s12 = smov [#allocation2]  }
  0x1a   : > { %p1116_p6 = scmp.ne.s32.totalorder %s1236_s29, %s1115_s11  ;;  %s1120_s18 = sshll.u32 %s1166_s12, 4  ;;  %s1121_s18 = int_to_ptr.vmem [resolvable:$false] %s1120_s18 }
  0x1b   : > { %s1122_s19 = scalar_lea.vmem %s1121_s18, 8192  ;;  %p1123_p9 = scmp.lt.s32.totalorder %s1236_s29, %s1121_s18 }
  0x1c   : > { %p1118_p10 = pnand %p1116_p6, %p1102_p11  ;;  %p1124_p0 = scmp.lt.s32.totalorder %s1122_s19, %s1115_s11 }
  0x1e   : > { %p1119_p12 = pneg %p1118_p10  ;;  %p1125_p1 = por %p1124_p0, %p1123_p9 }
  0x20   : > { %p1126_p2 = pnand %p1125_p1, %p1119_p12 }
  0x22   : > { %1129 = shalt.err (!%p1126_p2)
}
  0x23   : > { %s1167_s22 = smov 128   ;;  %s1168_s23 = smov 8  }
  0x24   : > { %1064 = dma.hbm_to_vmem [thread:$0]  (!%p1238_p8), %s1234_s27, 4096, %s1236_s29, %s1243_s4, %s1167_s22, %s1167_s22, %s1168_s23  }
  0x25   : > { %p153_p11 = scmp.lt.s32.totalorder %s1164_s15, 3  ;;  %p1498_p13 = scmp.ge.s32.totalorder %s1164_s15, 1 }
  0x27   : > { %p154_p3 = pnand %p1498_p13, %p153_p11 }
  0x28   : > { %s159_s24 = sand.u32 (!%p154_p3), 1, %s1156_s13  }
  0x29   : > { %157 = sbr.rel (%p154_p3) target bundleno = 481 (0x1e1), region = 32  ;;  %s916_s25 = sshll.u32 (!%p154_p3), %s159_s24, 8 }
  0x2a   : > { %s160_s26 = scalar_lea.sflag (!%p154_p3), [#allocation3], %s159_s24  ;;  %s1275_s28 = scalar_lea.vmem (!%p154_p3), [#allocation2], %s916_s25 }
  0x30   : > { %1147 = dma.done.wait (%p1225_p7), %s160_s26, 4096  }
  0x31   : > { %1149 = vsyncadd (%p1225_p7), %s160_s26, 4294963200  ;;  %vm226_vm0 = vcmask 261120   ;;  %v222_v0 = vld [vmem:[%s1493_s1] sm:$0xff]  ;;  %v223_v1 = vld [vmem:[%s1493_s1 + $0x8] sm:$0xff]  ;;  %vm662_vm1 = vcmask 130112   ;;  %vm669_vm2 = vcmask 195712  }
  0x32   : > { %v224_v2 = vld [vmem:[%s1493_s1 + $0x10] sm:$0xff]  ;;  %v1047_v3 = vpack.c.bf16 %v223_v1, %v222_v0  ;;  %v225_v4 = vld [vmem:[%s1493_s1 + $0x18] sm:$0xff]  ;;  %v190_v5 = vld [vmem:[%s1275_s28] sm:$0xff]  ;;  %vm676_vm3 = vcmask 261312   ;;  %vm683_vm4 = vcmask 326912   ;;  %vm690_vm5 = vcmask 392512  }
  0x33   : > { %v206_v6 = vld [vmem:[%s1275_s28 + $0x80] sm:$0xff]  ;;  %v1051_v7 = vpack.c.bf16 %v225_v4, %v224_v2  ;;  %999 = vmatprep.mubr.msk.f32.mxu0 %vm226_vm0, %v190_v5  ;;  %v191_v8 = vld [vmem:[%s1275_s28 + $0x8] sm:$0xff]  ;;  %v192_v10 = vld [vmem:[%s1275_s28 + $0x10] sm:$0xff]  ;;  %vm697_vm6 = vcmask 458112   ;;  %vm704_vm7 = vcmask 523712   ;;  %vm711_vm8 = vcmask 589312  }
  0x34   : > { %1023 = vmatprep.mubr.msk.f32.mxu1 %vm226_vm0, %v206_v6  ;;  %1048 = vmatprep.subr.bf16.mxu0 %v1047_v3  ;;  %v207_v9 = vld [vmem:[%s1275_s28 + $0x88] sm:$0xff]  ;;  %v208_v11 = vld [vmem:[%s1275_s28 + $0x90] sm:$0xff]  ;;  %v193_v12 = vld [vmem:[%s1275_s28 + $0x18] sm:$0xff]  ;;  %vm718_vm9 = vcmask 654912   ;;  %p186_p7 = scmp.lt.s32.totalorder %s1208_s16, 1  ;;  %vm725_vm10 = vcmask 720512  }
  0x35   : > { %1055 = vmatprep.subr.bf16.mxu1 %v1047_v3  ;;  %1050 = vmatpush3.bf16.msra.mxu0 %v1047_v3  ;;  %v209_v13 = vld [vmem:[%s1275_s28 + $0x98] sm:$0xff]  ;;  %v194_v14 = vld [vmem:[%s1275_s28 + $0x20] sm:$0xff]  ;;  %v195_v16 = vld [vmem:[%s1275_s28 + $0x28] sm:$0xff]  ;;  %vm732_vm11 = vcmask 786112   ;;  %vm739_vm12 = vcmask 851712   ;;  %vm746_vm13 = vcmask 917312  }
  0x36   : > { %1057 = vmatpush3.bf16.msra.mxu1 %v1047_v3  ;;  %1052 = vmatprep.subr.bf16.mxu0 %v1051_v7  ;;  %v210_v15 = vld [vmem:[%s1275_s28 + $0xa0] sm:$0xff]  ;;  %v211_v17 = vld [vmem:[%s1275_s28 + $0xa8] sm:$0xff]  ;;  %v196_v18 = vld [vmem:[%s1275_s28 + $0x30] sm:$0xff]  ;;  %s1504_s16 = smov (!%p186_p7, %s1208_s16), 1  ;;  %vm753_vm14 = vcmask 982912   ;;  %vm760_vm15 = vcmask 1048512  }
  0x37   : > { %1056 = vmatprep.subr.bf16.mxu1 %v1051_v7  ;;  %v212_v19 = vld [vmem:[%s1275_s28 + $0xb0] sm:$0xff]  ;;  %v197_v20 = vld [vmem:[%s1275_s28 + $0x38] sm:$0xff]  ;;  %v198_v22 = vld [vmem:[%s1275_s28 + $0x40] sm:$0xff]  ;;  %s917_s9 = sshll.u32 %s1504_s16, 1 }
  0x38   : > { %v213_v21 = vld [vmem:[%s1275_s28 + $0xb8] sm:$0xff]  ;;  %v214_v23 = vld [vmem:[%s1275_s28 + $0xc0] sm:$0xff]  ;;  %v199_v24 = vld [vmem:[%s1275_s28 + $0x48] sm:$0xff]  ;;  %s189_s12 = scalar_lea.vmem %s1495_s3, %s917_s9 }
  0x39   : > { %1054 = vmatpush3.bf16.msra.mxu0 %v1051_v7  ;;  %v215_v25 = vld [vmem:[%s1275_s28 + $0xc8] sm:$0xff]  ;;  %v200_v26 = vld [vmem:[%s1275_s28 + $0x50] sm:$0xff]  ;;  %v201_v28 = vld [vmem:[%s1275_s28 + $0x58] sm:$0xff] }
  0x3a   : > { %1058 = vmatpush3.bf16.msra.mxu1 %v1051_v7  ;;  %v216_v27 = vld [vmem:[%s1275_s28 + $0xd0] sm:$0xff]  ;;  %v217_v29 = vld [vmem:[%s1275_s28 + $0xd8] sm:$0xff]  ;;  %v202_v30 = vld [vmem:[%s1275_s28 + $0x60] sm:$0xff] }
  0x3b   : > { %v218_v31 = vld [vmem:[%s1275_s28 + $0xe0] sm:$0xff]  ;;  %v203_v32 = vld [vmem:[%s1275_s28 + $0x68] sm:$0xff]  ;;  %v204_v34 = vld [vmem:[%s1275_s28 + $0x70] sm:$0xff] }
  0x3c   : > { %1000 = vmatmul.mubr.msk.f32.vlgmr.msra.gmra.mrb[0].mxu0 %vm226_vm0, %v191_v8  ;;  %v219_v33 = vld [vmem:[%s1275_s28 + $0xe8] sm:$0xff]  ;;  %v220_v35 = vld [vmem:[%s1275_s28 + $0xf0] sm:$0xff]  ;;  %v205_v36 = vld [vmem:[%s1275_s28 + $0x78] sm:$0xff] }
  0x3d   : > { %1024 = vmatmul.mubr.msk.f32.vlgmr.msra.gmra.mrb[0].mxu1 %vm226_vm0, %v207_v9  ;;  %1002 = vmatprep.mubr.msk.f32.mxu0 %vm226_vm0, %v192_v10  ;;  %v221_v37 = vld [vmem:[%s1275_s28 + $0xf8] sm:$0xff]  ;;  %v1360_v38 = vld [vmem:[%s1494_s2] ss:$0 sm:$0xff] }
  0x3e   : > { %1026 = vmatprep.mubr.msk.f32.mxu1 %vm226_vm0, %v208_v11 }
  0x40   : > { %1003 = vmatmul.mubr.msk.f32.gmra.mrb[2].mxu0 %vm226_vm0, %v193_v12 }
  0x41   : > { %1027 = vmatmul.mubr.msk.f32.gmra.mrb[2].mxu1 %vm226_vm0, %v209_v13  ;;  %1005 = vmatprep.mubr.msk.f32.mxu0 %vm226_vm0, %v194_v14 }
  0x42   : > { %1029 = vmatprep.mubr.msk.f32.mxu1 %vm226_vm0, %v210_v15 }
  0x44   : > { %1006 = vmatmul.mubr.msk.f32.gmra.mrb[4].mxu0 %vm226_vm0, %v195_v16 }
  0x45   : > { %1030 = vmatmul.mubr.msk.f32.gmra.mrb[4].mxu1 %vm226_vm0, %v211_v17  ;;  %1008 = vmatprep.mubr.msk.f32.mxu0 %vm226_vm0, %v196_v18 }
  0x46   : > { %1032 = vmatprep.mubr.msk.f32.mxu1 %vm226_vm0, %v212_v19 }
  0x48   : > { %1009 = vmatmul.mubr.msk.f32.gmra.mrb[6].mxu0 %vm226_vm0, %v197_v20 }
  0x49   : > { %1033 = vmatmul.mubr.msk.f32.gmra.mrb[6].mxu1 %vm226_vm0, %v213_v21  ;;  %1011 = vmatprep.mubr.msk.f32.mxu0 %vm226_vm0, %v198_v22 }
  0x4a   : > { %1035 = vmatprep.mubr.msk.f32.mxu1 %vm226_vm0, %v214_v23 }
  0x4c   : > { %1012 = vmatmul.mubr.msk.f32.gmra.mrb[8].mxu0 %vm226_vm0, %v199_v24 }
  0x4d   : > { %1036 = vmatmul.mubr.msk.f32.gmra.mrb[8].mxu1 %vm226_vm0, %v215_v25  ;;  %1014 = vmatprep.mubr.msk.f32.mxu0 %vm226_vm0, %v200_v26 }
  0x4e   : > { %1038 = vmatprep.mubr.msk.f32.mxu1 %vm226_vm0, %v216_v27 }
  0x50   : > { %1015 = vmatmul.mubr.msk.f32.gmra.mrb[10].mxu0 %vm226_vm0, %v201_v28 }
  0x51   : > { %1039 = vmatmul.mubr.msk.f32.gmra.mrb[10].mxu1 %vm226_vm0, %v217_v29  ;;  %1017 = vmatprep.mubr.msk.f32.mxu0 %vm226_vm0, %v202_v30 }
  0x52   : > { %1041 = vmatprep.mubr.msk.f32.mxu1 %vm226_vm0, %v218_v31 }
  0x54   : > { %1018 = vmatmul.mubr.msk.f32.gmra.mrb[12].mxu0 %vm226_vm0, %v203_v32 }
  0x55   : > { %1042 = vmatmul.mubr.msk.f32.gmra.mrb[12].mxu1 %vm226_vm0, %v219_v33  ;;  %1020 = vmatprep.mubr.msk.f32.mxu0 %vm226_vm0, %v204_v34 }
  0x56   : > { %1044 = vmatprep.mubr.msk.f32.mxu1 %vm226_vm0, %v220_v35 }
  0x58   : > { %1021 = vmatmul.mubr.msk.f32.gmra.mrb[14].mxu0 %vm226_vm0, %v205_v36 }
  0x59   : > { %1045 = vmatmul.mubr.msk.f32.gmra.mrb[14].mxu1 %vm226_vm0, %v221_v37 }
 0x10f   : > { %v1001_v39 = vpop.f32.mrb[0].mxu0 }
 0x110   : > { %v1025_v40 = vpop.f32.mrb[0].mxu1  ;;  %v389_v41 = vpop.f32.mrb[1].mxu0  ;;  %v556_v44 = vadd.f32 %v1001_v39, %v1360_v38 }
 0x111   : > { %v469_v42 = vpop.f32.mrb[1].mxu1  ;;  %v572_v43 = vadd.f32 %v1025_v40, %v1360_v38  ;;  %v555_v47 = vadd.f32 %v1360_v38, %v389_v41 }
 0x112   : > { %589 = vmin.index.xlane.f32.xlu0 %v556_v44  ;;  %v571_v48 = vadd.f32 %v1360_v38, %v469_v42 }
 0x113   : > { %621 = vmin.index.xlane.f32.xlu1 %v572_v43  ;;  %v1004_v46 = vpop.f32.mrb[2].mxu0 }
 0x114   : > { %v1028_v45 = vpop.f32.mrb[2].mxu1  ;;  %v399_v49 = vpop.f32.mrb[3].mxu0  ;;  %v558_v52 = vadd.f32 %v1004_v46, %v1360_v38 }
 0x115   : > { %v479_v50 = vpop.f32.mrb[3].mxu1  ;;  %v574_v51 = vadd.f32 %v1028_v45, %v1360_v38  ;;  %v557_v59 = vadd.f32 %v1360_v38, %v399_v49 }
 0x116   : > { %587 = vmin.index.xlane.f32.xlu0 %v555_v47  ;;  %v573_v60 = vadd.f32 %v1360_v38, %v479_v50  ;;  %v651_v50 = vlaneseq }
 0x117   : > { %619 = vmin.index.xlane.f32.xlu1 %v571_v48  ;;  %v1007_v54 = vpop.f32.mrb[4].mxu0 }
 0x118   : > { %v1031_v53 = vpop.f32.mrb[4].mxu1  ;;  %v409_v55 = vpop.f32.mrb[5].mxu0  ;;  %v560_v0 = vadd.f32 %v1007_v54, %v1360_v38 }
 0x119   : > { %v489_v56 = vpop.f32.mrb[5].mxu1  ;;  %v576_v63 = vadd.f32 %v1031_v53, %v1360_v38  ;;  %v559_v7 = vadd.f32 %v1360_v38, %v409_v55  ;;  %v1398_v53 = vand.u32 127, %v651_v50 }
 0x11a   : > { %593 = vmin.index.xlane.f32.xlu0 %v558_v52  ;;  %v575_v8 = vadd.f32 %v1360_v38, %v489_v56  ;;  %v1405_v56 = vshrl.u32 %v651_v50, 7 }
 0x11b   : > { %625 = vmin.index.xlane.f32.xlu1 %v574_v51  ;;  %v1010_v58 = vpop.f32.mrb[6].mxu0  ;;  %v664_v55 = vadd.s32 4294967280, %v1398_v53  ;;  %v734_v50 = vadd.s32 4294967200, %v1398_v53 }
 0x11c   : > { %v1034_v57 = vpop.f32.mrb[6].mxu1  ;;  %v419_v61 = vpop.f32.mrb[7].mxu0  ;;  %v562_v12 = vadd.f32 %v1010_v58, %v1360_v38 }
 0x11d   : > { %v499_v62 = vpop.f32.mrb[7].mxu1  ;;  %v578_v11 = vadd.f32 %v1034_v57, %v1360_v38  ;;  %v561_v19 = vadd.f32 %v1360_v38, %v419_v61  ;;  %v657_v57 = vadd.s32 4294967288, %v1398_v53  ;;  %v671_v61 = vadd.s32 4294967272, %v1398_v53 }
 0x11e   : > { %591 = vmin.index.xlane.f32.xlu0 %v557_v59  ;;  %v577_v20 = vadd.f32 %v1360_v38, %v499_v62  ;;  %v667_v62 = vsub.s32 %v664_v55, %v1405_v56 }
 0x11f   : > { %623 = vmin.index.xlane.f32.xlu1 %v573_v60  ;;  %v1013_v2 = vpop.f32.mrb[8].mxu0  ;;  %v655_v60 = vsub.s32 %v1398_v53, %v1405_v56 }
 0x120   : > { %v1037_v1 = vpop.f32.mrb[8].mxu1  ;;  %v429_v3 = vpop.f32.mrb[9].mxu0  ;;  %v564_v24 = vadd.f32 %v1013_v2, %v1360_v38 }
 0x121   : > { %v509_v4 = vpop.f32.mrb[9].mxu1  ;;  %v580_v23 = vadd.f32 %v1037_v1, %v1360_v38  ;;  %v563_v25 = vadd.f32 %v1360_v38, %v429_v3 }
 0x122   : > { %597 = vmin.index.xlane.f32.xlu0 %v560_v0  ;;  %v579_v26 = vadd.f32 %v1360_v38, %v509_v4  ;;  %v660_v0 = vsub.s32 %v657_v57, %v1405_v56 }
 0x123   : > { %629 = vmin.index.xlane.f32.xlu1 %v576_v63  ;;  %v1016_v6 = vpop.f32.mrb[10].mxu0  ;;  %v678_v63 = vadd.s32 4294967264, %v1398_v53 }
 0x124   : > { %v1040_v5 = vpop.f32.mrb[10].mxu1  ;;  %v439_v9 = vpop.f32.mrb[11].mxu0  ;;  %v566_v28 = vadd.f32 %v1016_v6, %v1360_v38  ;;  %v674_v6 = vsub.s32 %v671_v61, %v1405_v56 }
 0x125   : > { %v519_v10 = vpop.f32.mrb[11].mxu1  ;;  %v582_v27 = vadd.f32 %v1040_v5, %v1360_v38  ;;  %v565_v29 = vadd.f32 %v1360_v38, %v439_v9  ;;  %v692_v5 = vadd.s32 4294967248, %v1398_v53  ;;  %v681_v9 = vsub.s32 %v678_v63, %v1405_v56 }
 0x126   : > { %595 = vmin.index.xlane.f32.xlu0 %v559_v7  ;;  %v581_v30 = vadd.f32 %v1360_v38, %v519_v10 }
 0x127   : > { %627 = vmin.index.xlane.f32.xlu1 %v575_v8  ;;  %v1019_v14 = vpop.f32.mrb[12].mxu0 }
 0x128   : > { %v1043_v13 = vpop.f32.mrb[12].mxu1  ;;  %v449_v15 = vpop.f32.mrb[13].mxu0  ;;  %v568_v32 = vadd.f32 %v1019_v14, %v1360_v38 }
 0x129   : > { %v529_v16 = vpop.f32.mrb[13].mxu1  ;;  %v584_v31 = vadd.f32 %v1043_v13, %v1360_v38  ;;  %v567_v33 = vadd.f32 %v1360_v38, %v449_v15  ;;  %v699_v13 = vadd.s32 4294967240, %v1398_v53 }
 0x12a   : > { %601 = vmin.index.xlane.f32.xlu0 %v562_v12  ;;  %v583_v34 = vadd.f32 %v1360_v38, %v529_v16  ;;  %v685_v12 = vadd.s32 4294967256, %v1398_v53 }
 0x12b   : > { %633 = vmin.index.xlane.f32.xlu1 %v578_v11  ;;  %v1022_v17 = vpop.f32.mrb[14].mxu0 }
 0x12c   : > { %v1046_v18 = vpop.f32.mrb[14].mxu1  ;;  %v459_v22 = vpop.f32.mrb[15].mxu0  ;;  %v570_v37 = vadd.f32 %v1022_v17, %v1360_v38 }
 0x12d   : > { %v539_v21 = vpop.f32.mrb[15].mxu1  ;;  %v569_v36 = vadd.f32 %v1360_v38, %v459_v22  ;;  %v586_v39 = vadd.f32 %v1046_v18, %v1360_v38  ;;  %v695_v18 = vsub.s32 %v692_v5, %v1405_v56 }
 0x12e   : > { %599 = vmin.index.xlane.f32.xlu0 %v561_v19  ;;  %v585_v35 = vadd.f32 %v1360_v38, %v539_v21  ;;  %v706_v19 = vadd.s32 4294967232, %v1398_v53 }
 0x12f   : > { %631 = vmin.index.xlane.f32.xlu1 %v577_v20 }
 0x132   : > { %605 = vmin.index.xlane.f32.xlu0 %v564_v24 }
 0x133   : > { %637 = vmin.index.xlane.f32.xlu1 %v580_v23 }
 0x136   : > { %603 = vmin.index.xlane.f32.xlu0 %v563_v25 }
 0x137   : > { %635 = vmin.index.xlane.f32.xlu1 %v579_v26  ;;  %v688_v26 = vsub.s32 %v685_v12, %v1405_v56 }
 0x13a   : > { %609 = vmin.index.xlane.f32.xlu0 %v566_v28 }
 0x13b   : > { %641 = vmin.index.xlane.f32.xlu1 %v582_v27  ;;  %v702_v27 = vsub.s32 %v699_v13, %v1405_v56 }
 0x13e   : > { %607 = vmin.index.xlane.f32.xlu0 %v565_v29 }
 0x13f   : > { %639 = vmin.index.xlane.f32.xlu1 %v581_v30 }
 0x142   : > { %613 = vmin.index.xlane.f32.xlu0 %v568_v32  ;;  %v709_v32 = vsub.s32 %v706_v19, %v1405_v56 }
 0x143   : > { %645 = vmin.index.xlane.f32.xlu1 %v584_v31 }
 0x146   : > { %611 = vmin.index.xlane.f32.xlu0 %v567_v33  ;;  %v720_v33 = vadd.s32 4294967216, %v1398_v53 }
 0x147   : > { %643 = vmin.index.xlane.f32.xlu1 %v583_v34 }
 0x14a   : > { %615 = vmin.index.xlane.f32.xlu0 %v569_v36 }
 0x14b   : > { %647 = vmin.index.xlane.f32.xlu1 %v585_v35 }
 0x14e   : > { %617 = vmin.index.xlane.f32.xlu0 %v570_v37 }
 0x14f   : > { %649 = vmin.index.xlane.f32.xlu1 %v586_v39 }
 0x19f   : > { %v590_v41 = vpop.xlane.xlu0 %589 }
 0x1a0   : > { %v622_v40 = vpop.xlane.xlu1 %621  ;;  %v661_v11 = vrot.slane %v590_v41, %v660_v0  ;;  %v713_v41 = vadd.s32 4294967224, %v1398_v53 }
 0x1a1   : > { %v770_v10 = vrot.slane %v622_v40, %v660_v0  ;;  %v737_v0 = vsub.s32 %v734_v50, %v1405_v56 }
 0x1a3   : > { %v588_v43 = vpop.xlane.xlu0 %587 }
 0x1a4   : > { %v620_v42 = vpop.xlane.xlu1 %619  ;;  %v656_v4 = vrot.slane %v588_v43, %v655_v60 }
 0x1a5   : > { %v766_v3 = vrot.slane %v620_v42, %v655_v60  ;;  %v727_v42 = vadd.s32 4294967208, %v1398_v53 }
 0x1a6   : > { %v663_v17 = vsel %vm662_vm1, %v661_v11, %v656_v4 }
 0x1a7   : > { %v594_v45 = vpop.xlane.xlu0 %593  ;;  %v771_v16 = vsel %vm662_vm1, %v770_v10, %v766_v3  ;;  %v748_v3 = vadd.s32 4294967184, %v1398_v53 }
 0x1a8   : > { %v626_v44 = vpop.xlane.xlu1 %625  ;;  %v675_v25 = vrot.slane %v594_v45, %v674_v6 }
 0x1a9   : > { %v780_v24 = vrot.slane %v626_v44, %v674_v6  ;;  %v751_v13 = vsub.s32 %v748_v3, %v1405_v56 }
 0x1ab   : > { %v592_v47 = vpop.xlane.xlu0 %591 }
 0x1ac   : > { %v624_v46 = vpop.xlane.xlu1 %623  ;;  %v668_v8 = vrot.slane %v592_v47, %v667_v62  ;;  %v723_v47 = vsub.s32 %v720_v33, %v1405_v56 }
 0x1ad   : > { %v775_v7 = vrot.slane %v624_v46, %v667_v62 }
 0x1ae   : > { %v670_v21 = vsel %vm669_vm2, %v668_v8, %v663_v17  ;;  %v741_v8 = vadd.s32 4294967192, %v1398_v53 }
 0x1af   : > { %v1396_v49 = vpop.xlane.xlu0 %597  ;;  %v776_v20 = vsel %vm669_vm2, %v775_v7, %v771_v16  ;;  %v677_v31 = vsel %vm676_vm3, %v675_v25, %v670_v21 }
 0x1b0   : > { %v1394_v48 = vpop.xlane.xlu1 %629  ;;  %v781_v30 = vsel %vm676_vm3, %v780_v24, %v776_v20  ;;  %v689_v40 = vrot.slane %v1396_v49, %v688_v26  ;;  %v744_v19 = vsub.s32 %v741_v8, %v1405_v56 }
 0x1b1   : > { %v790_v39 = vrot.slane %v1394_v48, %v688_v26 }
 0x1b3   : > { %v596_v52 = vpop.xlane.xlu0 %595 }
 0x1b4   : > { %v628_v51 = vpop.xlane.xlu1 %627  ;;  %v682_v23 = vrot.slane %v596_v52, %v681_v9 }
 0x1b5   : > { %v785_v22 = vrot.slane %v628_v51, %v681_v9 }
 0x1b6   : > { %v684_v35 = vsel %vm683_vm4, %v682_v23, %v677_v31 }
 0x1b7   : > { %v1402_v54 = vpop.xlane.xlu0 %601  ;;  %v786_v34 = vsel %vm683_vm4, %v785_v22, %v781_v30  ;;  %v691_v46 = vsel %vm690_vm5, %v689_v40, %v684_v35 }
 0x1b8   : > { %v1400_v38 = vpop.xlane.xlu1 %633  ;;  %v791_v45 = vsel %vm690_vm5, %v790_v39, %v786_v34  ;;  %v703_v57 = vrot.slane %v1402_v54, %v702_v27 }
 0x1b9   : > { %v800_v55 = vrot.slane %v1400_v38, %v702_v27 }
 0x1bb   : > { %v1410_v59 = vpop.xlane.xlu0 %599 }
 0x1bc   : > { %v1408_v58 = vpop.xlane.xlu1 %631  ;;  %v696_v37 = vrot.slane %v1410_v59, %v695_v18  ;;  %v730_v59 = vsub.s32 %v727_v42, %v1405_v56 }
 0x1bd   : > { %v795_v36 = vrot.slane %v1408_v58, %v695_v18  ;;  %v716_v58 = vsub.s32 %v713_v41, %v1405_v56 }
 0x1be   : > { %v698_v48 = vsel %vm697_vm6, %v696_v37, %v691_v46 }
 0x1bf   : > { %v1420_v2 = vpop.xlane.xlu0 %605  ;;  %v796_v51 = vsel %vm697_vm6, %v795_v36, %v791_v45  ;;  %v705_v63 = vsel %vm704_vm7, %v703_v57, %v698_v48 }
 0x1c0   : > { %v1418_v1 = vpop.xlane.xlu1 %637  ;;  %v801_v62 = vsel %vm704_vm7, %v800_v55, %v796_v51  ;;  %v717_v7 = vrot.slane %v1420_v2, %v716_v58 }
 0x1c1   : > { %v810_v6 = vrot.slane %v1418_v1, %v716_v58 }
 0x1c3   : > { %v604_v15 = vpop.xlane.xlu0 %603 }
 0x1c4   : > { %v636_v14 = vpop.xlane.xlu1 %635  ;;  %v710_v49 = vrot.slane %v604_v15, %v709_v32 }
 0x1c5   : > { %v805_v52 = vrot.slane %v636_v14, %v709_v32  ;;  %v755_v14 = vadd.s32 4294967176, %v1398_v53 }
 0x1c6   : > { %v712_v4 = vsel %vm711_vm8, %v710_v49, %v705_v63 }
 0x1c7   : > { %v1435_v29 = vpop.xlane.xlu0 %609  ;;  %v806_v38 = vsel %vm711_vm8, %v805_v52, %v801_v62  ;;  %v719_v12 = vsel %vm718_vm9, %v717_v7, %v712_v4  ;;  %v758_v53 = vsub.s32 %v755_v14, %v1405_v56 }
 0x1c8   : > { %v1433_v28 = vpop.xlane.xlu1 %641  ;;  %v811_v11 = vsel %vm718_vm9, %v810_v6, %v806_v38  ;;  %v731_v18 = vrot.slane %v1435_v29, %v730_v59 }
 0x1c9   : > { %v820_v2 = vrot.slane %v1433_v28, %v730_v59 }
 0x1cb   : > { %v608_v44 = vpop.xlane.xlu0 %607 }
 0x1cc   : > { %v640_v43 = vpop.xlane.xlu1 %639  ;;  %v724_v54 = vrot.slane %v608_v44, %v723_v47 }
 0x1cd   : > { %v815_v5 = vrot.slane %v640_v43, %v723_v47 }
 0x1ce   : > { %v726_v16 = vsel %vm725_vm10, %v724_v54, %v719_v12 }
 0x1cf   : > { %v614_v61 = vpop.xlane.xlu0 %613  ;;  %v816_v15 = vsel %vm725_vm10, %v815_v5, %v811_v11  ;;  %v733_v23 = vsel %vm732_vm11, %v731_v18, %v726_v16 }
 0x1d0   : > { %v646_v60 = vpop.xlane.xlu1 %645  ;;  %v821_v22 = vsel %vm732_vm11, %v820_v2, %v816_v15  ;;  %v745_v30 = vrot.slane %v614_v61, %v744_v19 }
 0x1d1   : > { %v830_v28 = vrot.slane %v646_v60, %v744_v19 }
 0x1d3   : > { %v612_v10 = vpop.xlane.xlu0 %611 }
 0x1d4   : > { %v644_v9 = vpop.xlane.xlu1 %643  ;;  %v738_v1 = vrot.slane %v612_v10, %v737_v0 }
 0x1d5   : > { %v825_v17 = vrot.slane %v644_v9, %v737_v0 }
 0x1d6   : > { %v740_v25 = vsel %vm739_vm12, %v738_v1, %v733_v23 }
 0x1d7   : > { %v616_v21 = vpop.xlane.xlu0 %615  ;;  %v826_v24 = vsel %vm739_vm12, %v825_v17, %v821_v22  ;;  %v747_v33 = vsel %vm746_vm13, %v745_v30, %v740_v25 }
 0x1d8   : > { %v648_v20 = vpop.xlane.xlu1 %647  ;;  %v752_v27 = vrot.slane %v616_v21, %v751_v13  ;;  %v831_v32 = vsel %vm746_vm13, %v830_v28, %v826_v24 }
 0x1d9   : > { %v835_v26 = vrot.slane %v648_v20, %v751_v13 }
 0x1da   : > { %v754_v36 = vsel %vm753_vm14, %v752_v27, %v747_v33 }
 0x1db   : > { %v618_v31 = vpop.xlane.xlu0 %617  ;;  %v836_v56 = vsel %vm753_vm14, %v835_v26, %v831_v32 }
 0x1dc   : > { %v650_v29 = vpop.xlane.xlu1 %649  ;;  %v759_v35 = vrot.slane %v618_v31, %v758_v53 }
 0x1dd   : > { %v840_v34 = vrot.slane %v650_v29, %v758_v53 }
 0x1de   : > { %v761_v39 = vsel %vm760_vm15, %v759_v35, %v754_v36 }
 0x1df   : > { %v841_v37 = vsel %vm760_vm15, %v840_v34, %v836_v56  ;;  %762 = vst [vmem:[%s189_s12] ss:$2 sm:$0x1] %v761_v39 }
 0x1e0   : > { %951 = vst [vmem:[%s189_s12 + $0x1] ss:$2 sm:$0x1] %v841_v37 }
 0x1e1 PF: > { %p13_p8 = scmp.ge.s32.totalorder %s1211_s17, 4   ;;  %s1499_s12 = smov %s1156_s13 }
 0x1e2   : > { %s1500_s13 = smov %s1160_s14  ;;  %s1501_s14 = smov %s1221_s20 }
 0x1e3   : > { %s1502_s15 = smov %s1211_s17  ;;  %15 = sbr.rel (!%p13_p8) target bundleno = 3 (0x3), region = 73 }
 0x1ea   :  { %863 = vsyncpa [#allocation3], 1 }
 0x1eb   :  { %865 = vsyncpa [#allocation3 + $0x1], 1 }

</bundles_post_ra>
